<compile_context>
chip_gen: v6e
topology: v6e:2x2x1
jax: 0.10.0
libtpu: 0.0.40
codegen_flags: <defaults>
</compile_context>

<pallas_src>
import functools
import math

import jax
import jax.numpy as jnp
from jax import lax
from jax.experimental import pallas as pl
from jax.experimental.pallas import tpu as pltpu

_LANES = 128
_CHUNK_ROWS = 32          # fori sub-chunk: 4 vregs/value -> intermediates stay in vregs
_MAX_TILE_ROWS = 4096     # 4096 * 128 * 4 B = 2 MiB (f32) per input per grid step
_MIN_SPLIT_ROWS = 512     # above this, force >=2 grid tiles (pipelining + v7x megacore)
_NUM_SUMS = 8             # 7 used + 1 zero pad row -> full (8, 128) output tile


def _round_up(x, m):
    return -(-x // m) * m


def _vmem_limit_bytes():
    # Generation-aware scoped-VMEM limit: ~3/4 of physical per-core VMEM,
    # clamped so v7x (64 MiB/TC) stays safe while v5e/v6e (128 MiB) get headroom.
    try:
        cap = int(pltpu.get_tpu_info().vmem_capacity_bytes)
    except Exception:  # fall back conservatively (interpret mode, API drift, ...)
        cap = 64 * 1024 * 1024
    return max(32 * 1024 * 1024, min(cap * 3 // 4, 96 * 1024 * 1024))


def _choose_tiling(rows):
    """Pick (tile_rows, n_tiles).  tile_rows is a multiple of 8 and <= rows."""
    max_full = max(8, (rows // 8) * 8)            # largest multiple-of-8 tile <= rows
    if rows <= _MIN_SPLIT_ROWS:
        tr = max_full                             # tiny input: one tile is fine
    else:
        # Force >=2 (even) tiles so v5e/v6e get DMA/compute overlap and v7x's
        # two TensorCores both get work; cap the tile at ~2 MiB/input.
        n_tiles = max(2, pl.cdiv(rows, _MAX_TILE_ROWS))
        n_tiles += n_tiles % 2
        tr = min(_MAX_TILE_ROWS, _round_up(pl.cdiv(rows, n_tiles), 8), max_full)
    return tr, pl.cdiv(rows, tr)


def _partial_sums_kernel(pred_ref, gt_ref, mask_ref, out_ref, *,
                         tile_rows, total_rows, text_thres, center_thres,
                         needs_row_mask, unroll):
    """Writes an (8, 128) block of per-lane partial sums for this tile.

    Row layout:
      0: sum(smooth_l1(sigmoid(pred), gt))
      1: sum(text_map)                        (text_map   = gt > text_thres)
      2: sum(text_map * mask)
      3: sum(mask)                            (bg_map*mask derived in glue)
      4: sum(center_gt)                       (center_gt  = where(gt > center_thres, gt, 0))
      5: sum(center_gt * mask)
      6: sum(text_gt * mask)                  (text_gt    = where(gt > text_thres, gt, 0))
      7: zeros (pad row)
    """
    tile_start = pl.program_id(0) * tile_rows

    def process(start, rows, accs):
        """Consume `rows` block rows starting at row `start`; fold into accs."""
        sl = pl.ds(start, rows)
        pred = pred_ref[sl, :].astype(jnp.float32)
        gt = gt_ref[sl, :].astype(jnp.float32)
        msk = mask_ref[sl, :].astype(jnp.float32)

        if needs_row_mask:
            # Rows past the end of the (total_rows, 128) view belong to the
            # partial last block and hold garbage -> zero their contribution.
            rem = (total_rows - tile_start) - start
            valid = lax.broadcasted_iota(jnp.int32, (rows, _LANES), 0) < rem
            gt = jnp.where(valid, gt, 0.0)
            msk = jnp.where(valid, msk, 0.0)

        p = jax.nn.sigmoid(pred)
        d = p - gt
        ad = jnp.abs(d)
        smooth = jnp.where(ad < 1.0, 0.5 * d * d, ad - 0.5)   # beta = 1.0 (PyTorch default)
        if needs_row_mask:
            smooth = jnp.where(valid, smooth, 0.0)

        is_text = gt > text_thres
        is_center = gt > center_thres
        gt_mask = gt * msk
        vals = (smooth,
                jnp.where(is_text, 1.0, 0.0),        # text_map
                jnp.where(is_text, msk, 0.0),        # text_map * mask
                msk,                                 # mask
                jnp.where(is_center, gt, 0.0),       # center_gt
                jnp.where(is_center, gt_mask, 0.0),  # center_gt * mask
                jnp.where(is_text, gt_mask, 0.0))    # text_gt * mask

        def red(x):  # (rows, 128) -> (8, 128): pure vreg adds, no cross-sublane traffic
            r = x[0:8]
            for k in range(1, rows // 8):
                r = r + x[8 * k:8 * (k + 1)]
            return r

        return tuple(a + red(v) for a, v in zip(accs, vals))

    n_chunks = tile_rows // _CHUNK_ROWS
    rem_rows = tile_rows % _CHUNK_ROWS            # static; multiple of 8

    accs = tuple(jnp.zeros((8, _LANES), jnp.float32) for _ in range(_NUM_SUMS - 1))

    if n_chunks > 0:
        def body(c, carry):
            start = pl.multiple_of(c * _CHUNK_ROWS, _CHUNK_ROWS)
            return process(start, _CHUNK_ROWS, carry)
        accs = lax.fori_loop(0, n_chunks, body, accs, unroll=unroll)
    if rem_rows:
        accs = process(n_chunks * _CHUNK_ROWS, rem_rows, accs)

    # Direct per-row stores (no concatenate of (1,128) vectors).
    for i, acc in enumerate(accs):
        out_ref[i:i + 1, :] = jnp.sum(acc, axis=0, keepdims=True)
    out_ref[_NUM_SUMS - 1:_NUM_SUMS, :] = jnp.zeros((1, _LANES), jnp.float32)


def gaussian_map_loss(gaussian_map, gaussian_gt, training_mask,
                      text_thres=0.2, center_thres=0.7, eps=1e-6):
    """Pallas implementation of GaussianMapLoss.forward.

    Inputs are arrays of identical shape (NCHW in the reference).  Returns
    (weighted_mse_loss.mean(), text_region_loss, center_region_loss).
    `eps` is kept for API parity with the PyTorch module (unused there too).
    Maps may be bf16 and the mask bool/int8 — the kernel upcasts internally.
    """
    del eps  # unused in the reference forward pass
    n_elems = int(math.prod(gaussian_map.shape))

    rows_data = -(-n_elems // _LANES)
    rows = max(rows_data, 8)
    pad_count = rows * _LANES - n_elems           # 0 in the common case

    def as2d(x):
        flat = x.reshape(-1)
        if pad_count:
            # Rare path (n_elems not a multiple of 128, or a tiny input): pad
            # with zeros.  gt/mask pads contribute nothing (thresholds > 0 and
            # mask-weighted terms vanish); the pred pad contributes exactly
            # smooth_l1(sigmoid(0), 0) = 0.125 per element, subtracted below.
            flat = jnp.pad(flat, (0, pad_count))
        return flat.reshape(rows, _LANES)         # free reshape when no pad

    pred2d = as2d(gaussian_map)
    gt2d = as2d(gaussian_gt)
    mask2d = as2d(training_mask)

    tr, n_tiles = _choose_tiling(rows)
    needs_row_mask = (rows % tr) != 0             # only the last tile can be partial
    n_chunks = tr // _CHUNK_ROWS
    unroll = 2 if (n_chunks % 2 == 0 and n_chunks > 0) else 1

    kernel = functools.partial(
        _partial_sums_kernel,
        tile_rows=tr, total_rows=rows,
        text_thres=float(text_thres), center_thres=float(center_thres),
        needs_row_mask=needs_row_mask, unroll=unroll)

    in_blk = pl.BlockSpec((tr, _LANES), lambda t: (t, 0))
    partials = pl.pallas_call(
        kernel,
        out_shape=jax.ShapeDtypeStruct((n_tiles * _NUM_SUMS, _LANES), jnp.float32),
        grid_spec=pltpu.PrefetchScalarGridSpec(
            num_scalar_prefetch=0,
            grid=(n_tiles,),
            in_specs=[in_blk, in_blk, in_blk],
            out_specs=pl.BlockSpec((_NUM_SUMS, _LANES), lambda t: (t, 0)),
        ),
        compiler_params=pltpu.CompilerParams(
            dimension_semantics=("parallel",),    # independent per-tile outputs
            vmem_limit_bytes=_vmem_limit_bytes(),
        ),
    )(pred2d, gt2d, mask2d)

    sums = partials.reshape(n_tiles, _NUM_SUMS, _LANES).sum(axis=(0, 2))

    n = float(n_elems)
    # Exact correction for the rare zero-pad path: smooth_l1(sigmoid(0), 0) = 0.125.
    sum_smooth = sums[0] - 0.125 * pad_count
    pos_num = sums[1]
    sum_text_mask = sums[2]
    sum_mask = sums[3]
    sum_center_gt = sums[4]
    sum_center_gt_mask = sums[5]
    sum_text_gt_mask = sums[6]
    sum_bg_mask = sum_mask - sum_text_mask        # sum((1 - text_map) * mask)

    # scalar mean smooth-L1 (matches PyTorch legacy reduce='none' -> 'mean')
    mse_loss = sum_smooth / n

    neg_num = n - pos_num
    pos_weight = neg_num / n                      # == neg_num / (pos_num + neg_num)
    neg_weight = 1.0 - pos_weight

    weighted_mse_mean = mse_loss * (pos_weight * sum_text_mask +
                                    neg_weight * sum_bg_mask) / n
    center_region_loss = jnp.where(
        sum_center_gt > 0,
        mse_loss * sum_center_gt_mask /
        jnp.where(sum_center_gt > 0, sum_center_gt, 1.0),
        0.0)
    text_region_loss = jnp.where(
        pos_num > 0,
        mse_loss * sum_text_gt_mask / jnp.where(pos_num > 0, pos_num, 1.0),
        0.0)
    return weighted_mse_mean, text_region_loss, center_region_loss


def _reference(gaussian_map, gaussian_gt, training_mask,
               text_thres=0.2, center_thres=0.7):
    """Pure-JAX reference mirroring the actual PyTorch semantics."""
    pred = jax.nn.sigmoid(gaussian_map)
    gt = gaussian_gt
    d = pred - gt
    ad = jnp.abs(d)
    smooth = jnp.where(ad < 1.0, 0.5 * d * d, ad - 0.5)
    mse_loss = jnp.mean(smooth)  # scalar, see semantics note above

    text_map = jnp.where(gt > text_thres, 1.0, 0.0)
    center_gt = jnp.where(gt > center_thres, gt, 0.0)
    text_gt = jnp.where(gt > text_thres, gt, 0.0)
    bg_map = 1.0 - text_map
    pos_num = jnp.sum(text_map)
    neg_num = jnp.sum(bg_map)
    pos_weight = neg_num / (pos_num + neg_num)
    neg_weight = 1.0 - pos_weight
    weighted = mse_loss * (text_map * pos_weight + bg_map * neg_weight) * training_mask
    center_loss = jnp.where(
        jnp.sum(center_gt) > 0,
        jnp.sum(center_gt * mse_loss * training_mask) /
        jnp.where(jnp.sum(center_gt) > 0, jnp.sum(center_gt), 1.0), 0.0)
    text_loss = jnp.where(
        pos_num > 0,
        jnp.sum(text_gt * mse_loss * training_mask) /
        jnp.where(pos_num > 0, pos_num, 1.0), 0.0)
    return jnp.mean(weighted), text_loss, center_loss


if __name__ == "__main__":
    key = jax.random.PRNGKey(0)

    def run_case(shape, ks):
        k1, k2, k3 = jax.random.split(ks, 3)
        gm = jax.random.normal(k1, shape, dtype=jnp.float32)
        gg = jax.random.uniform(k2, shape, dtype=jnp.float32)
        tm = (jax.random.uniform(k3, shape) > 0.1).astype(jnp.float32)
        out = jax.block_until_ready(gaussian_map_loss(gm, gg, tm))
        ref = _reference(gm, gg, tm)
        for o, r in zip(out, ref):
            assert jnp.allclose(o, r, rtol=1e-5, atol=1e-6), (shape, o, r)

    keys = jax.random.split(key, 3)
    # Primary small NCHW case (exact (rows,128) view, single tile, no masking).
    run_case((2, 4, 16, 16), keys[0])
    # Exercises the partial-last-block in-kernel row masking (45 rows, 40-row tiles).
    run_case((2, 3, 24, 40), keys[1])
    # Exercises the rare pad-to-128 fallback with the exact smooth-L1 correction.
    run_case((1, 3, 10, 13), keys[2])

    print("KERNEL_OK")
</pallas_src>

<mosaic_0001>
module attributes {stable_mosaic.version = 11 : i64} {
  func.func @_partial_sums_kernel(%arg0: i32, %arg1: memref<16x128xf32, #tpu.memory_space<vmem>>, %arg2: memref<16x128xf32, #tpu.memory_space<vmem>>, %arg3: memref<16x128xf32, #tpu.memory_space<vmem>>, %arg4: memref<8x128xf32, #tpu.memory_space<vmem>>) attributes {dimension_semantics = [#tpu.dimension_semantics<parallel>], iteration_bounds = array<i64: 1>, scalar_prefetch = 0 : i64, scratch_operands = 0 : i64, tpu.core_type = #tpu.core_type<tc>, window_params = [{transform_indices = @transform_0, window_bounds = array<i64: 16, 128>}, {transform_indices = @transform_1, window_bounds = array<i64: 16, 128>}, {transform_indices = @transform_2, window_bounds = array<i64: 16, 128>}, {transform_indices = @transform_3, window_bounds = array<i64: 8, 128>}]} {
    %cst = arith.constant 0.000000e+00 : f32
    %0 = vector.broadcast %cst : f32 to vector<8x128xf32>
    %cst_0 = arith.constant 0.000000e+00 : f32
    %1 = vector.broadcast %cst_0 : f32 to vector<8x128xf32>
    %cst_1 = arith.constant 0.000000e+00 : f32
    %2 = vector.broadcast %cst_1 : f32 to vector<8x128xf32>
    %cst_2 = arith.constant 0.000000e+00 : f32
    %3 = vector.broadcast %cst_2 : f32 to vector<8x128xf32>
    %cst_3 = arith.constant 0.000000e+00 : f32
    %4 = vector.broadcast %cst_3 : f32 to vector<8x128xf32>
    %cst_4 = arith.constant 0.000000e+00 : f32
    %5 = vector.broadcast %cst_4 : f32 to vector<8x128xf32>
    %cst_5 = arith.constant 0.000000e+00 : f32
    %6 = vector.broadcast %cst_5 : f32 to vector<8x128xf32>
    %c0 = arith.constant 0 : index
    %c0_6 = arith.constant 0 : index
    %7 = vector.load %arg1[%c0, %c0_6] : memref<16x128xf32, #tpu.memory_space<vmem>>, vector<16x128xf32>
    %c0_7 = arith.constant 0 : index
    %c0_8 = arith.constant 0 : index
    %8 = vector.load %arg2[%c0_7, %c0_8] : memref<16x128xf32, #tpu.memory_space<vmem>>, vector<16x128xf32>
    %c0_9 = arith.constant 0 : index
    %c0_10 = arith.constant 0 : index
    %9 = vector.load %arg3[%c0_9, %c0_10] : memref<16x128xf32, #tpu.memory_space<vmem>>, vector<16x128xf32>
    %10 = arith.negf %7 : vector<16x128xf32>
    %11 = math.exp %10 : vector<16x128xf32>
    %cst_11 = arith.constant 1.000000e+00 : f32
    %12 = vector.broadcast %cst_11 : f32 to vector<16x128xf32>
    %13 = arith.addf %12, %11 : vector<16x128xf32>
    %14 = arith.divf %12, %13 : vector<16x128xf32>
    %15 = arith.subf %14, %8 : vector<16x128xf32>
    %16 = math.absf %15 : vector<16x128xf32>
    %cst_12 = arith.constant 1.000000e+00 : f32
    %17 = vector.broadcast %cst_12 : f32 to vector<16x128xf32>
    %18 = arith.cmpf olt, %16, %17 : vector<16x128xf32>
    %cst_13 = arith.constant 5.000000e-01 : f32
    %19 = vector.broadcast %cst_13 : f32 to vector<16x128xf32>
    %20 = arith.mulf %19, %15 : vector<16x128xf32>
    %21 = arith.mulf %20, %15 : vector<16x128xf32>
    %cst_14 = arith.constant 5.000000e-01 : f32
    %22 = vector.broadcast %cst_14 : f32 to vector<16x128xf32>
    %23 = arith.subf %16, %22 : vector<16x128xf32>
    %24 = arith.select %18, %21, %23 : vector<16x128xi1>, vector<16x128xf32>
    %cst_15 = arith.constant 2.000000e-01 : f32
    %25 = vector.broadcast %cst_15 : f32 to vector<16x128xf32>
    %26 = arith.cmpf ogt, %8, %25 : vector<16x128xf32>
    %cst_16 = arith.constant 0.699999988 : f32
    %27 = vector.broadcast %cst_16 : f32 to vector<16x128xf32>
    %28 = arith.cmpf ogt, %8, %27 : vector<16x128xf32>
    %29 = arith.mulf %8, %9 : vector<16x128xf32>
    %cst_17 = arith.constant 1.000000e+00 : f32
    %cst_18 = arith.constant 0.000000e+00 : f32
    %30 = vector.broadcast %cst_17 : f32 to vector<16x128xf32>
    %31 = vector.broadcast %cst_18 : f32 to vector<16x128xf32>
    %32 = arith.select %26, %30, %31 : vector<16x128xi1>, vector<16x128xf32>
    %cst_19 = arith.constant 0.000000e+00 : f32
    %33 = vector.broadcast %cst_19 : f32 to vector<16x128xf32>
    %34 = arith.select %26, %9, %33 : vector<16x128xi1>, vector<16x128xf32>
    %cst_20 = arith.constant 0.000000e+00 : f32
    %35 = vector.broadcast %cst_20 : f32 to vector<16x128xf32>
    %36 = arith.select %28, %8, %35 : vector<16x128xi1>, vector<16x128xf32>
    %cst_21 = arith.constant 0.000000e+00 : f32
    %37 = vector.broadcast %cst_21 : f32 to vector<16x128xf32>
    %38 = arith.select %28, %29, %37 : vector<16x128xi1>, vector<16x128xf32>
    %cst_22 = arith.constant 0.000000e+00 : f32
    %39 = vector.broadcast %cst_22 : f32 to vector<16x128xf32>
    %40 = arith.select %26, %29, %39 : vector<16x128xi1>, vector<16x128xf32>
    %41 = vector.extract_strided_slice %24 {offsets = [0, 0], sizes = [8, 128], strides = [1, 1]} : vector<16x128xf32> to vector<8x128xf32>
    %42 = vector.extract_strided_slice %24 {offsets = [8, 0], sizes = [8, 128], strides = [1, 1]} : vector<16x128xf32> to vector<8x128xf32>
    %43 = arith.addf %41, %42 : vector<8x128xf32>
    %44 = arith.addf %0, %43 : vector<8x128xf32>
    %45 = vector.extract_strided_slice %32 {offsets = [0, 0], sizes = [8, 128], strides = [1, 1]} : vector<16x128xf32> to vector<8x128xf32>
    %46 = vector.extract_strided_slice %32 {offsets = [8, 0], sizes = [8, 128], strides = [1, 1]} : vector<16x128xf32> to vector<8x128xf32>
    %47 = arith.addf %45, %46 : vector<8x128xf32>
    %48 = arith.addf %1, %47 : vector<8x128xf32>
    %49 = vector.extract_strided_slice %34 {offsets = [0, 0], sizes = [8, 128], strides = [1, 1]} : vector<16x128xf32> to vector<8x128xf32>
    %50 = vector.extract_strided_slice %34 {offsets = [8, 0], sizes = [8, 128], strides = [1, 1]} : vector<16x128xf32> to vector<8x128xf32>
    %51 = arith.addf %49, %50 : vector<8x128xf32>
    %52 = arith.addf %2, %51 : vector<8x128xf32>
    %53 = vector.extract_strided_slice %9 {offsets = [0, 0], sizes = [8, 128], strides = [1, 1]} : vector<16x128xf32> to vector<8x128xf32>
    %54 = vector.extract_strided_slice %9 {offsets = [8, 0], sizes = [8, 128], strides = [1, 1]} : vector<16x128xf32> to vector<8x128xf32>
    %55 = arith.addf %53, %54 : vector<8x128xf32>
    %56 = arith.addf %3, %55 : vector<8x128xf32>
    %57 = vector.extract_strided_slice %36 {offsets = [0, 0], sizes = [8, 128], strides = [1, 1]} : vector<16x128xf32> to vector<8x128xf32>
    %58 = vector.extract_strided_slice %36 {offsets = [8, 0], sizes = [8, 128], strides = [1, 1]} : vector<16x128xf32> to vector<8x128xf32>
    %59 = arith.addf %57, %58 : vector<8x128xf32>
    %60 = arith.addf %4, %59 : vector<8x128xf32>
    %61 = vector.extract_strided_slice %38 {offsets = [0, 0], sizes = [8, 128], strides = [1, 1]} : vector<16x128xf32> to vector<8x128xf32>
    %62 = vector.extract_strided_slice %38 {offsets = [8, 0], sizes = [8, 128], strides = [1, 1]} : vector<16x128xf32> to vector<8x128xf32>
    %63 = arith.addf %61, %62 : vector<8x128xf32>
    %64 = arith.addf %5, %63 : vector<8x128xf32>
    %65 = vector.extract_strided_slice %40 {offsets = [0, 0], sizes = [8, 128], strides = [1, 1]} : vector<16x128xf32> to vector<8x128xf32>
    %66 = vector.extract_strided_slice %40 {offsets = [8, 0], sizes = [8, 128], strides = [1, 1]} : vector<16x128xf32> to vector<8x128xf32>
    %67 = arith.addf %65, %66 : vector<8x128xf32>
    %68 = arith.addf %6, %67 : vector<8x128xf32>
    %cst_23 = arith.constant dense<0.000000e+00> : vector<128xf32>
    %69 = vector.multi_reduction <add>, %44, %cst_23 [0] : vector<8x128xf32> to vector<128xf32>
    %70 = vector.shape_cast %69 : vector<128xf32> to vector<1x128xf32>
    %c0_24 = arith.constant 0 : index
    %c0_25 = arith.constant 0 : index
    %71 = vector.load %arg4[%c0_24, %c0_25] : memref<8x128xf32, #tpu.memory_space<vmem>>, vector<1x128xf32>
    tpu.vector_store %arg4[%c0_24, %c0_25], %70 {strides = array<i32>} : memref<8x128xf32, #tpu.memory_space<vmem>>, vector<1x128xf32>,
    %cst_26 = arith.constant dense<0.000000e+00> : vector<128xf32>
    %72 = vector.multi_reduction <add>, %48, %cst_26 [0] : vector<8x128xf32> to vector<128xf32>
    %73 = vector.shape_cast %72 : vector<128xf32> to vector<1x128xf32>
    %c1 = arith.constant 1 : index
    %c0_27 = arith.constant 0 : index
    %74 = vector.load %arg4[%c1, %c0_27] : memref<8x128xf32, #tpu.memory_space<vmem>>, vector<1x128xf32>
    tpu.vector_store %arg4[%c1, %c0_27], %73 {strides = array<i32>} : memref<8x128xf32, #tpu.memory_space<vmem>>, vector<1x128xf32>,
    %cst_28 = arith.constant dense<0.000000e+00> : vector<128xf32>
    %75 = vector.multi_reduction <add>, %52, %cst_28 [0] : vector<8x128xf32> to vector<128xf32>
    %76 = vector.shape_cast %75 : vector<128xf32> to vector<1x128xf32>
    %c2 = arith.constant 2 : index
    %c0_29 = arith.constant 0 : index
    %77 = vector.load %arg4[%c2, %c0_29] : memref<8x128xf32, #tpu.memory_space<vmem>>, vector<1x128xf32>
    tpu.vector_store %arg4[%c2, %c0_29], %76 {strides = array<i32>} : memref<8x128xf32, #tpu.memory_space<vmem>>, vector<1x128xf32>,
    %cst_30 = arith.constant dense<0.000000e+00> : vector<128xf32>
    %78 = vector.multi_reduction <add>, %56, %cst_30 [0] : vector<8x128xf32> to vector<128xf32>
    %79 = vector.shape_cast %78 : vector<128xf32> to vector<1x128xf32>
    %c3 = arith.constant 3 : index
    %c0_31 = arith.constant 0 : index
    %80 = vector.load %arg4[%c3, %c0_31] : memref<8x128xf32, #tpu.memory_space<vmem>>, vector<1x128xf32>
    tpu.vector_store %arg4[%c3, %c0_31], %79 {strides = array<i32>} : memref<8x128xf32, #tpu.memory_space<vmem>>, vector<1x128xf32>,
    %cst_32 = arith.constant dense<0.000000e+00> : vector<128xf32>
    %81 = vector.multi_reduction <add>, %60, %cst_32 [0] : vector<8x128xf32> to vector<128xf32>
    %82 = vector.shape_cast %81 : vector<128xf32> to vector<1x128xf32>
    %c4 = arith.constant 4 : index
    %c0_33 = arith.constant 0 : index
    %83 = vector.load %arg4[%c4, %c0_33] : memref<8x128xf32, #tpu.memory_space<vmem>>, vector<1x128xf32>
    tpu.vector_store %arg4[%c4, %c0_33], %82 {strides = array<i32>} : memref<8x128xf32, #tpu.memory_space<vmem>>, vector<1x128xf32>,
    %cst_34 = arith.constant dense<0.000000e+00> : vector<128xf32>
    %84 = vector.multi_reduction <add>, %64, %cst_34 [0] : vector<8x128xf32> to vector<128xf32>
    %85 = vector.shape_cast %84 : vector<128xf32> to vector<1x128xf32>
    %c5 = arith.constant 5 : index
    %c0_35 = arith.constant 0 : index
    %86 = vector.load %arg4[%c5, %c0_35] : memref<8x128xf32, #tpu.memory_space<vmem>>, vector<1x128xf32>
    tpu.vector_store %arg4[%c5, %c0_35], %85 {strides = array<i32>} : memref<8x128xf32, #tpu.memory_space<vmem>>, vector<1x128xf32>,
    %cst_36 = arith.constant dense<0.000000e+00> : vector<128xf32>
    %87 = vector.multi_reduction <add>, %68, %cst_36 [0] : vector<8x128xf32> to vector<128xf32>
    %88 = vector.shape_cast %87 : vector<128xf32> to vector<1x128xf32>
    %c6 = arith.constant 6 : index
    %c0_37 = arith.constant 0 : index
    %89 = vector.load %arg4[%c6, %c0_37] : memref<8x128xf32, #tpu.memory_space<vmem>>, vector<1x128xf32>
    tpu.vector_store %arg4[%c6, %c0_37], %88 {strides = array<i32>} : memref<8x128xf32, #tpu.memory_space<vmem>>, vector<1x128xf32>,
    %cst_38 = arith.constant 0.000000e+00 : f32
    %90 = vector.broadcast %cst_38 : f32 to vector<1x128xf32>
    %c7 = arith.constant 7 : index
    %c0_39 = arith.constant 0 : index
    %91 = vector.load %arg4[%c7, %c0_39] : memref<8x128xf32, #tpu.memory_space<vmem>>, vector<1x128xf32>
    tpu.vector_store %arg4[%c7, %c0_39], %90 {strides = array<i32>} : memref<8x128xf32, #tpu.memory_space<vmem>>, vector<1x128xf32>,
    return
  }
  func.func @transform_0(%arg0: i32) -> (i32, i32) {
    %c0_i32 = arith.constant 0 : i32
    %c0_i32_0 = arith.constant 0 : i32
    return %arg0, %c0_i32 : i32, i32
  }
  func.func @transform_1(%arg0: i32) -> (i32, i32) {
    %c0_i32 = arith.constant 0 : i32
    %c0_i32_0 = arith.constant 0 : i32
    return %arg0, %c0_i32 : i32, i32
  }
  func.func @transform_2(%arg0: i32) -> (i32, i32) {
    %c0_i32 = arith.constant 0 : i32
    %c0_i32_0 = arith.constant 0 : i32
    return %arg0, %c0_i32 : i32, i32
  }
  func.func @transform_3(%arg0: i32) -> (i32, i32) {
    %c0_i32 = arith.constant 0 : i32
    %c0_i32_0 = arith.constant 0 : i32
    return %arg0, %c0_i32 : i32, i32
  }
}

</mosaic_0001>

<bundles_post_ra>
// kernel: tpu_custom_call.1
= control target key start
LH: loop header
LB: loop body
LE: loop exit
PB: predicated region body
PF: predicated region fallthrough
CT: control target
= control target key end

     0   :  { %8 = vsyncpa [#allocation3], 0  ;;  %s354_s0 = inlined_call_operand.hbm [shape: f32[16,128], index: 0, kind: input, shape index: {}]   ;;  %s355_s1 = inlined_call_operand.hbm [shape: f32[16,128], index: 1, kind: input, shape index: {}]   ;;  %s356_s2 = inlined_call_operand.hbm [shape: f32[16,128], index: 2, kind: input, shape index: {}]   ;;  %s357_s3 = inlined_call_operand.hbm [shape: f32[8,128], index: 3, kind: output, shape index: {}]  }
   0x1   :  { %9 = vsyncpa [#allocation6], 0 }
   0x2   :  { %10 = vsyncpa [#allocation4], 0  ;;  %s289_s12 = smov [#allocation5]   ;;  %s290_s14 = smov [#allocation2]  }
   0x3   :  { %s28_s13 = sshll.u32 %s289_s12, 4  ;;  %s16_s15 = sshll.u32 %s290_s14, 4  ;;  %s29_s13 = int_to_ptr.vmem [resolvable:$true] %s28_s13  ;;  %s17_s15 = int_to_ptr.vmem [resolvable:$true] %s16_s15 }
   0x4   :  { %s211_s16 = scalar_lea.vmem %s29_s13, 256  ;;  %p216_p1 = scmp.lt.s32.totalorder %s29_s13, %s29_s13 }
   0x5   :  { %p212_p0 = scmp.ne.s32.totalorder %s29_s13, %s211_s16  ;;  %p217_p2 = scmp.lt.s32.totalorder %s211_s16, %s211_s16 }
   0x7   :  { %p218_p3 = por %p217_p2, %p216_p1 }
   0x9   :  { %p219_p4 = pnand %p218_p3, %p212_p0 }
   0xb   :  { %222 = shalt.err (!%p219_p4)
}
   0xc   :  { %s291_s17 = smov 128   ;;  %s292_s18 = smov 8  }
   0xd   :  { %34 = dma.hbm_to_vmem [thread:$0]  %s355_s1, 256, %s29_s13, [#allocation6], %s291_s17, %s291_s17, %s292_s18  }
   0xe   :  { %s231_s21 = scalar_lea.vmem %s17_s15, 256  ;;  %p236_p6 = scmp.lt.s32.totalorder %s17_s15, %s17_s15 }
   0xf   :  { %p232_p5 = scmp.ne.s32.totalorder %s17_s15, %s231_s21  ;;  %p237_p7 = scmp.lt.s32.totalorder %s231_s21, %s231_s21 }
  0x11   :  { %p238_p8 = por %p237_p7, %p236_p6 }
  0x13   :  { %p239_p9 = pnand %p238_p8, %p232_p5 }
  0x15   :  { %242 = shalt.err (!%p239_p9)
}
  0x16   :  { %22 = dma.hbm_to_vmem [thread:$0]  %s354_s0, 256, %s17_s15, [#allocation3], %s291_s17, %s291_s17, %s292_s18  }
  0x17   :  { %s293_s24 = smov [#allocation7]  }
  0x18   :  { %s40_s25 = sshll.u32 %s293_s24, 4  ;;  %s41_s25 = int_to_ptr.vmem [resolvable:$true] %s40_s25 }
  0x19   :  { %s251_s26 = scalar_lea.vmem %s41_s25, 256  ;;  %p256_p11 = scmp.lt.s32.totalorder %s41_s25, %s41_s25 }
  0x1a   :  { %p252_p10 = scmp.ne.s32.totalorder %s41_s25, %s251_s26  ;;  %p257_p12 = scmp.lt.s32.totalorder %s251_s26, %s251_s26 }
  0x1c   :  { %p258_p13 = por %p257_p12, %p256_p11 }
  0x1e   :  { %p259_p0 = pnand %p258_p13, %p252_p10 }
  0x20   :  { %262 = shalt.err (!%p259_p0)
}
  0x21   :  { %46 = dma.hbm_to_vmem [thread:$0]  %s356_s2, 256, %s41_s25, [#allocation6], %s291_s17, %s291_s17, %s292_s18  }
  0x22   :  { %283 = dma.done.wait [#allocation3], 256  }
  0x23   :  { %284 = vsyncadd [#allocation3], 4294967040 }
  0x24   :  { %285 = dma.done.wait [#allocation6], 512  }
  0x25   :  { %286 = vsyncadd [#allocation6], 4294966784  ;;  %v294_v0 = vmov 0.0   ;;  %v56_v1 = vld [vmem:[#allocation2] sm:$0xff]  ;;  %v57_v2 = vld [vmem:[#allocation2 + $0x8] sm:$0xff]  ;;  %s295_s0 = smov [#allocation8]  }
  0x26   :  { %167 = vst [vmem:[#allocation8 + $0x7] sm:$0x1] %v294_v0  ;;  %v325_v3 = vld [vmem:[#allocation5] sm:$0xff]  ;;  %v327_v4 = vld [vmem:[#allocation5 + $0x8] sm:$0xff]  ;;  %v184_v5 = vmul.f32 -1.442695, %v56_v1 }
  0x27   :  { %v185_v6 = vmul.f32 -1.442695, %v57_v2  ;;  %v60_v7 = vld [vmem:[#allocation7] sm:$0xff]  ;;  %vm88_vm0 = vcmp.gt.f32.partialorder %v325_v3, 0.2  ;;  %v61_v8 = vld [vmem:[#allocation7 + $0x8] sm:$0xff] }
  0x28   :  { %vm89_vm1 = vcmp.gt.f32.partialorder %v327_v4, 0.2  ;;  %v92_v9 = vmul.f32 %v60_v7, %v325_v3  ;;  %195 = vpow2.f32 %v184_v5  ;;  %v94_v10 = vsel %vm88_vm0, 1.0, %v294_v0  ;;  %s174_s2 = sshll.u32 %s295_s0, 4  ;;  %s175_s2 = int_to_ptr.vmem [resolvable:$true] %s174_s2 }
  0x29   :  { %v95_v11 = vsel %vm89_vm1, 1.0, %v294_v0  ;;  %v96_v12 = vsel %vm88_vm0, %v60_v7, 0.0  ;;  %197 = vpow2.f32 %v185_v6  ;;  %v97_v14 = vsel %vm89_vm1, %v61_v8, 0.0  ;;  %s263_s28 = scalar_lea.vmem %s175_s2, 128  ;;  %p268_p2 = scmp.lt.s32.totalorder %s175_s2, %s175_s2 }
  0x2a   :  { %v106_v13 = vadd.f32 %v95_v11, %v94_v10  ;;  %v110_v15 = vadd.f32 %v61_v8, %v60_v7  ;;  %v108_v16 = vadd.f32 %v97_v14, %v96_v12  ;;  %vm90_vm2 = vcmp.gt.f32.partialorder %v325_v3, 0.7  ;;  %p264_p1 = scmp.ne.s32.totalorder %s175_s2, %s263_s28  ;;  %p269_p3 = scmp.lt.s32.totalorder %s263_s28, %s263_s28 }
  0x2b   :  { %vm91_vm3 = vcmp.gt.f32.partialorder %v327_v4, 0.7  ;;  %v93_v17 = vmul.f32 %v61_v8, %v327_v4  ;;  %v98_v20 = vsel %vm90_vm2, %v325_v3, 0.0  ;;  %v100_v24 = vsel %vm90_vm2, %v92_v9, 0.0 }
  0x2c   :  { %v125_v18 = vrot.slane %v106_v13, 4  ;;  %v139_v19 = vrot.slane %v110_v15, 4  ;;  %v99_v21 = vsel %vm91_vm3, %v327_v4, 0.0  ;;  %v132_v22 = vrot.slane %v108_v16, 4  ;;  %p270_p4 = por %p269_p3, %p268_p2 }
  0x2d   :  { %v112_v23 = vadd.f32 %v99_v21, %v98_v20  ;;  %v101_v25 = vsel %vm91_vm3, %v93_v17, 0.0  ;;  %v102_v29 = vsel %vm88_vm0, %v92_v9, 0.0  ;;  %v103_v32 = vsel %vm89_vm1, %v93_v17, 0.0 }
  0x2e   :  { %v126_v26 = vadd.f32 %v125_v18, %v106_v13  ;;  %v140_v27 = vadd.f32 %v139_v19, %v110_v15  ;;  %v114_v28 = vadd.f32 %v101_v25, %v100_v24  ;;  %v133_v30 = vadd.f32 %v132_v22, %v108_v16  ;;  %p271_p5 = pnand %p270_p4, %p264_p1 }
  0x2f   :  { %v146_v31 = vrot.slane %v112_v23, 4  ;;  %v116_v36 = vadd.f32 %v103_v32, %v102_v29 }
  0x30   :  { %v127_v33 = vrot.slane %v126_v26, 2  ;;  %v141_v34 = vrot.slane %v140_v27, 2  ;;  %v153_v35 = vrot.slane %v114_v28, 4  ;;  %v134_v37 = vrot.slane %v133_v30, 2 }
  0x31   :  { %v147_v38 = vadd.f32 %v146_v31, %v112_v23  ;;  %v160_v42 = vrot.slane %v116_v36, 4 }
  0x32   :  { %v128_v39 = vadd.f32 %v127_v33, %v126_v26  ;;  %v142_v40 = vadd.f32 %v141_v34, %v140_v27  ;;  %v154_v41 = vadd.f32 %v153_v35, %v114_v28  ;;  %v135_v43 = vadd.f32 %v134_v37, %v133_v30 }
  0x33   :  { %v148_v44 = vrot.slane %v147_v38, 2  ;;  %v161_v48 = vadd.f32 %v160_v42, %v116_v36 }
  0x34   :  { %v129_v45 = vrot.slane %v128_v39, 1  ;;  %v143_v46 = vrot.slane %v142_v40, 1  ;;  %v155_v47 = vrot.slane %v154_v41, 2  ;;  %v136_v49 = vrot.slane %v135_v43, 1 }
  0x35   :  { %v149_v50 = vadd.f32 %v148_v44, %v147_v38  ;;  %v196_v51 = vpop.eup %195  ;;  %v162_v55 = vrot.slane %v161_v48, 2 }
  0x36   :  { %v130_v52 = vadd.f32 %v129_v45, %v128_v39  ;;  %v144_v53 = vadd.f32 %v143_v46, %v142_v40  ;;  %v156_v54 = vadd.f32 %v155_v47, %v154_v41  ;;  %v198_v56 = vpop.eup %197  ;;  %v68_v57 = vadd.f32 1.0, %v196_v51 }
  0x37   :  { %v137_v58 = vadd.f32 %v136_v49, %v135_v43  ;;  %v150_v59 = vrot.slane %v149_v50, 1  ;;  %v69_v60 = vadd.f32 1.0, %v198_v56  ;;  %v163_v62 = vadd.f32 %v162_v55, %v161_v48 }
  0x38   :  { %131 = vst [vmem:[#allocation8 + $0x1] sm:$0x1] %v130_v52  ;;  %145 = vst [vmem:[#allocation8 + $0x3] sm:$0x1] %v144_v53  ;;  %v157_v61 = vrot.slane %v156_v54, 1  ;;  %199 = vrcp.f32 %v68_v57 }
  0x39   :  { %138 = vst [vmem:[#allocation8 + $0x2] sm:$0x1] %v137_v58  ;;  %v151_v63 = vadd.f32 %v150_v59, %v149_v50  ;;  %201 = vrcp.f32 %v69_v60  ;;  %v164_v1 = vrot.slane %v163_v62, 1 }
  0x3a   :  { %v158_v0 = vadd.f32 %v157_v61, %v156_v54 }
  0x3b   :  { %152 = vst [vmem:[#allocation8 + $0x4] sm:$0x1] %v151_v63  ;;  %v165_v2 = vadd.f32 %v164_v1, %v163_v62 }
  0x3c   :  { %159 = vst [vmem:[#allocation8 + $0x5] sm:$0x1] %v158_v0 }
  0x3d   :  { %166 = vst [vmem:[#allocation8 + $0x6] sm:$0x1] %v165_v2 }
  0x45   :  { %v200_v5 = vpop.eup %199 }
  0x46   :  { %v202_v6 = vpop.eup %201  ;;  %v74_v7 = vsub.f32 %v200_v5, %v325_v3 }
  0x47   :  { %v75_v8 = vsub.f32 %v202_v6, %v327_v4 }
  0x48   :  { %v76_v9 = vand.u32 2147483647, %v74_v7  ;;  %v80_v10 = vmul.f32 0.5, %v74_v7 }
  0x49   :  { %v77_v11 = vand.u32 2147483647, %v75_v8  ;;  %v81_v12 = vmul.f32 0.5, %v75_v8 }
  0x4a   :  { %vm78_vm4 = vcmp.lt.f32.partialorder %v76_v9, 1.0  ;;  %v82_v13 = vmul.f32 %v80_v10, %v74_v7  ;;  %v186_v14 = vadd.f32 -0.5, %v76_v9 }
  0x4b   :  { %vm79_vm5 = vcmp.lt.f32.partialorder %v77_v11, 1.0  ;;  %v83_v15 = vmul.f32 %v81_v12, %v75_v8  ;;  %v187_v16 = vadd.f32 -0.5, %v77_v11 }
  0x4c   :  { %v86_v17 = vsel %vm78_vm4, %v82_v13, %v186_v14 }
  0x4d   :  { %v87_v18 = vsel %vm79_vm5, %v83_v15, %v187_v16 }
  0x4e   :  { %v104_v19 = vadd.f32 %v87_v18, %v86_v17 }
  0x50   :  { %v118_v20 = vrot.slane %v104_v19, 4 }
  0x52   :  { %v119_v21 = vadd.f32 %v118_v20, %v104_v19 }
  0x54   :  { %v120_v22 = vrot.slane %v119_v21, 2 }
  0x56   :  { %v121_v23 = vadd.f32 %v120_v22, %v119_v21 }
  0x58   :  { %v122_v3 = vrot.slane %v121_v23, 1 }
  0x5a   :  { %v123_v4 = vadd.f32 %v122_v3, %v121_v23 }
  0x5c   :  { %124 = vst [vmem:[#allocation8] sm:$0x1] %v123_v4 }
  0x5d   :  { %274 = shalt.err (!%p271_p5)
}
  0x5e   :  { %177 = dma.vmem_to_hbm [thread:$0]  %s175_s2, 128, %s357_s3, [#allocation4]  }
  0x5f   :  { %287 = dma.done.wait [#allocation4], 128  }
  0x60   :  { %288 = vsyncadd [#allocation4], 4294967168 }
  0x61   :  { %181 = vsyncpa [#allocation3], 1 }
  0x62   :  { %182 = vsyncpa [#allocation6], 1 }
  0x63   :  { %183 = vsyncpa [#allocation4], 1 }

</bundles_post_ra>
